<compile_context>
chip_gen: v6e
topology: v6e:2x2x1
jax: 0.10.0
libtpu: 0.0.40
codegen_flags: <defaults>
</compile_context>

<pallas_src>
import functools
import math

import jax
import jax.numpy as jnp
from jax.experimental import pallas as pl
from jax.experimental.pallas import tpu as pltpu


# --------------------------------------------------------------------------
# Kernel
# --------------------------------------------------------------------------
def _layer_normal_kernel(x_ref, g_ref, b_ref, o_ref, *, eps, d, dp):
    x = x_ref[...].astype(jnp.float32)                        # (bm, dp)

    # Mean over the TRUE hidden size d.  Pad columns are zero-filled by the
    # wrapper, so they contribute nothing to the row sum.
    mu = jnp.sum(x, axis=-1, keepdims=True) * jnp.float32(1.0 / d)
    diff = x - mu
    if dp != d:
        # Keep the pad columns out of the variance (there diff would be -mu).
        lane = jax.lax.broadcasted_iota(jnp.int32, (1, dp), 1)
        diff = jnp.where(lane < d, diff, 0.0)

    # torch.std default is unbiased (Bessel's correction: divide by N-1).
    var = jnp.sum(diff * diff, axis=-1, keepdims=True) * jnp.float32(
        1.0 / max(d - 1, 1)
    )

    # clamp(sqrt(var), eps) followed by reciprocal  ==  rsqrt(max(var, eps^2)).
    var_c = jnp.maximum(var, jnp.float32(eps) * jnp.float32(eps))
    r = jax.lax.rsqrt(var_c)                                   # EUP slot
    r = r * (1.5 - 0.5 * var_c * r * r)                        # one NR step -> ~f32 exact

    y = diff * r                                               # (bm, dp)
    g = g_ref[...].astype(jnp.float32)                         # (1, dp)
    b = b_ref[...].astype(jnp.float32)                         # (1, dp)
    o_ref[...] = (y * g + b).astype(o_ref.dtype)


# --------------------------------------------------------------------------
# Block-size selection
# --------------------------------------------------------------------------
def _pick_block_rows(m, dp, in_itemsize, out_itemsize, vmem_budget=16 << 20):
    """Row-block size sized against the REAL per-grid-step VMEM footprint."""
    # Per row of one grid step:
    #   2 x double-buffered input  (input dtype)
    #   2 x double-buffered output (output dtype)
    #   ~3 whole-tile f32 temporaries inside the kernel (x_f32, diff, y)
    bytes_per_row = dp * (2 * in_itemsize + 2 * out_itemsize + 3 * 4)
    # Sublane packing: 8 rows for 32-bit, 16 for bf16, 32 for 8-bit dtypes.
    row_align = max(8, 32 // max(in_itemsize, 1))

    if m <= row_align:
        return m  # tiny input: one block covering all rows (full-dim block is legal)

    bm = max(1, vmem_budget // max(bytes_per_row, 1))
    bm = min(bm, 1024)              # >=512 rows already sits at ~85%+ of HBM roofline
    bm = min(bm, -(-m // 2))        # keep >=2 blocks -> v7x megacore sharding
    bm = max(row_align, (bm // row_align) * row_align)
    return bm


# --------------------------------------------------------------------------
# Wrapper
# --------------------------------------------------------------------------
def layer_normal(x, weight, bias, eps=1e-6):
    """Pallas implementation of LayerNormal.forward for arbitrary-rank x."""
    orig_shape = x.shape
    d = orig_shape[-1]
    m = int(math.prod(orig_shape[:-1])) if len(orig_shape) > 1 else 1
    x2 = x.reshape(m, d)
    w2 = jnp.asarray(weight).reshape(1, d)
    b2 = jnp.asarray(bias).reshape(1, d)

    # Lane-dense hidden dim: zero-pad to the next multiple of 128; the pad is
    # masked out of the variance in-kernel and sliced off afterwards.
    dp = ((d + 127) // 128) * 128
    if dp != d:
        x2 = jnp.pad(x2, ((0, 0), (0, dp - d)))
        w2 = jnp.pad(w2, ((0, 0), (0, dp - d)))
        b2 = jnp.pad(b2, ((0, 0), (0, dp - d)))

    itemsize = jnp.dtype(x.dtype).itemsize
    bm = _pick_block_rows(m, dp, itemsize, itemsize)
    grid = (pl.cdiv(m, bm),)

    out = pl.pallas_call(
        functools.partial(_layer_normal_kernel, eps=float(eps), d=d, dp=dp),
        out_shape=jax.ShapeDtypeStruct((m, dp), x.dtype),
        grid=grid,
        in_specs=[
            pl.BlockSpec((bm, dp), lambda i: (i, 0)),   # activation row tile
            pl.BlockSpec((1, dp), lambda i: (0, 0)),    # weight (resident row)
            pl.BlockSpec((1, dp), lambda i: (0, 0)),    # bias   (resident row)
        ],
        out_specs=pl.BlockSpec((bm, dp), lambda i: (i, 0)),
        compiler_params=pltpu.CompilerParams(
            dimension_semantics=("parallel",),          # megacore-shardable rows
            vmem_limit_bytes=32 << 20,                  # safe on v5e/v6e/v7x
        ),
    )(x2, w2, b2)

    if dp != d:
        out = out[:, :d]
    return out.reshape(orig_shape)


# --------------------------------------------------------------------------
# Pure-JAX reference (mirrors the PyTorch forward exactly)
# --------------------------------------------------------------------------
def layer_normal_ref(x, weight, bias, eps=1e-6):
    mu = jnp.mean(x, axis=-1, keepdims=True)
    sigma = jnp.std(x, axis=-1, keepdims=True, ddof=1)   # unbiased, like torch.std
    sigma = jnp.maximum(sigma, eps)
    return (x - mu) / sigma * weight + bias


# --------------------------------------------------------------------------
# Demo / self-test
# --------------------------------------------------------------------------
if __name__ == "__main__":
    key = jax.random.PRNGKey(0)
    k_x, k_w, k_b = jax.random.split(key, 3)

    B, S, H = 2, 8, 256                                      # hidden_size = 256
    x = jax.random.normal(k_x, (B, S, H), jnp.float32)
    weight = jnp.ones((H,), jnp.float32) + 0.1 * jax.random.normal(k_w, (H,), jnp.float32)
    bias = 0.05 * jax.random.normal(k_b, (H,), jnp.float32)

    out = layer_normal(x, weight, bias, eps=1e-6)
    out = jax.block_until_ready(out)
    ref = layer_normal_ref(x, weight, bias, eps=1e-6)
    assert out.shape == x.shape
    # Slightly relaxed vs. exact sqrt+divide because 1/sigma now goes through
    # the (Newton-refined) rsqrt path.
    assert jnp.allclose(out, ref, atol=2e-5, rtol=2e-5), (
        f"max abs err = {float(jnp.max(jnp.abs(out - ref)))}"
    )

    # Secondary check: non-multiple-of-128 hidden dim + ragged row tiling
    # (exercises the lane-padding and cdiv-grid paths).
    B2, S2, H2 = 2, 5, 96
    x_b = jax.random.normal(k_x, (B2, S2, H2), jnp.float32)
    w_b = jnp.ones((H2,), jnp.float32)
    b_b = jnp.zeros((H2,), jnp.float32)
    out_b = jax.block_until_ready(layer_normal(x_b, w_b, b_b, eps=1e-6))
    ref_b = layer_normal_ref(x_b, w_b, b_b, eps=1e-6)
    assert jnp.allclose(out_b, ref_b, atol=2e-5, rtol=2e-5), (
        f"max abs err (padded path) = {float(jnp.max(jnp.abs(out_b - ref_b)))}"
    )

    print("KERNEL_OK")
</pallas_src>

<mosaic_0001>
module attributes {stable_mosaic.version = 11 : i64} {
  func.func @_layer_normal_kernel(%arg0: i32, %arg1: memref<8x256xf32, #tpu.memory_space<vmem>>, %arg2: memref<1x256xf32, #tpu.memory_space<vmem>>, %arg3: memref<1x256xf32, #tpu.memory_space<vmem>>, %arg4: memref<8x256xf32, #tpu.memory_space<vmem>>) attributes {dimension_semantics = [#tpu.dimension_semantics<parallel>], iteration_bounds = array<i64: 2>, scalar_prefetch = 0 : i64, scratch_operands = 0 : i64, tpu.core_type = #tpu.core_type<tc>, window_params = [{transform_indices = @transform_0, window_bounds = array<i64: 8, 256>}, {pipeline_mode = #tpu.pipeline_mode<synchronous>, transform_indices = @transform_1, window_bounds = array<i64: 1, 256>}, {pipeline_mode = #tpu.pipeline_mode<synchronous>, transform_indices = @transform_2, window_bounds = array<i64: 1, 256>}, {transform_indices = @transform_3, window_bounds = array<i64: 8, 256>}]} {
    %c0 = arith.constant 0 : index
    %c0_0 = arith.constant 0 : index
    %0 = vector.load %arg1[%c0, %c0_0] : memref<8x256xf32, #tpu.memory_space<vmem>>, vector<8x256xf32>
    %cst = arith.constant dense<0.000000e+00> : vector<8xf32>
    %1 = vector.multi_reduction <add>, %0, %cst [1] : vector<8x256xf32> to vector<8xf32>
    %2 = vector.shape_cast %1 : vector<8xf32> to vector<8x1xf32>
    %cst_1 = arith.constant 3.906250e-03 : f32
    %3 = vector.broadcast %cst_1 : f32 to vector<8x1xf32>
    %4 = arith.mulf %2, %3 : vector<8x1xf32>
    %5 = vector.broadcast %4 : vector<8x1xf32> to vector<8x256xf32>
    %6 = arith.subf %0, %5 : vector<8x256xf32>
    %7 = arith.mulf %6, %6 : vector<8x256xf32>
    %cst_2 = arith.constant dense<0.000000e+00> : vector<8xf32>
    %8 = vector.multi_reduction <add>, %7, %cst_2 [1] : vector<8x256xf32> to vector<8xf32>
    %9 = vector.shape_cast %8 : vector<8xf32> to vector<8x1xf32>
    %cst_3 = arith.constant 0.00392156886 : f32
    %10 = vector.broadcast %cst_3 : f32 to vector<8x1xf32>
    %11 = arith.mulf %9, %10 : vector<8x1xf32>
    %cst_4 = arith.constant 9.99999997E-7 : f32
    %cst_5 = arith.constant 9.99999997E-7 : f32
    %12 = arith.mulf %cst_4, %cst_5 : f32
    %13 = vector.broadcast %12 : f32 to vector<8x1xf32>
    %14 = arith.maximumf %11, %13 : vector<8x1xf32>
    %15 = math.rsqrt %14 : vector<8x1xf32>
    %cst_6 = arith.constant 5.000000e-01 : f32
    %16 = vector.broadcast %cst_6 : f32 to vector<8x1xf32>
    %17 = arith.mulf %16, %14 : vector<8x1xf32>
    %18 = arith.mulf %17, %15 : vector<8x1xf32>
    %19 = arith.mulf %18, %15 : vector<8x1xf32>
    %cst_7 = arith.constant 1.500000e+00 : f32
    %20 = vector.broadcast %cst_7 : f32 to vector<8x1xf32>
    %21 = arith.subf %20, %19 : vector<8x1xf32>
    %22 = arith.mulf %15, %21 : vector<8x1xf32>
    %23 = vector.broadcast %22 : vector<8x1xf32> to vector<8x256xf32>
    %24 = arith.mulf %6, %23 : vector<8x256xf32>
    %c0_8 = arith.constant 0 : index
    %c0_9 = arith.constant 0 : index
    %25 = vector.load %arg2[%c0_8, %c0_9] : memref<1x256xf32, #tpu.memory_space<vmem>>, vector<1x256xf32>
    %c0_10 = arith.constant 0 : index
    %c0_11 = arith.constant 0 : index
    %26 = vector.load %arg3[%c0_10, %c0_11] : memref<1x256xf32, #tpu.memory_space<vmem>>, vector<1x256xf32>
    %27 = vector.broadcast %25 : vector<1x256xf32> to vector<8x256xf32>
    %28 = arith.mulf %24, %27 : vector<8x256xf32>
    %29 = vector.broadcast %26 : vector<1x256xf32> to vector<8x256xf32>
    %30 = arith.addf %28, %29 : vector<8x256xf32>
    %c0_12 = arith.constant 0 : index
    %c0_13 = arith.constant 0 : index
    %31 = vector.load %arg4[%c0_12, %c0_13] : memref<8x256xf32, #tpu.memory_space<vmem>>, vector<8x256xf32>
    tpu.vector_store %arg4[%c0_12, %c0_13], %30 {strides = array<i32>} : memref<8x256xf32, #tpu.memory_space<vmem>>, vector<8x256xf32>,
    return
  }
  func.func @transform_0(%arg0: i32) -> (i32, i32) {
    %c0_i32 = arith.constant 0 : i32
    %c0_i32_0 = arith.constant 0 : i32
    return %arg0, %c0_i32 : i32, i32
  }
  func.func @transform_1(%arg0: i32) -> (i32, i32) {
    %c0_i32 = arith.constant 0 : i32
    %c0_i32_0 = arith.constant 0 : i32
    %c0_i32_1 = arith.constant 0 : i32
    return %c0_i32, %c0_i32_0 : i32, i32
  }
  func.func @transform_2(%arg0: i32) -> (i32, i32) {
    %c0_i32 = arith.constant 0 : i32
    %c0_i32_0 = arith.constant 0 : i32
    %c0_i32_1 = arith.constant 0 : i32
    return %c0_i32, %c0_i32_0 : i32, i32
  }
  func.func @transform_3(%arg0: i32) -> (i32, i32) {
    %c0_i32 = arith.constant 0 : i32
    %c0_i32_0 = arith.constant 0 : i32
    return %arg0, %c0_i32 : i32, i32
  }
}

</mosaic_0001>

<bundles_post_ra>
// kernel: tpu_custom_call.1
= control target key start
LH: loop header
LB: loop body
LE: loop exit
PB: predicated region body
PF: predicated region fallthrough
CT: control target
= control target key end

     0   :  { %8 = vsyncpa [#allocation3], 0  ;;  %s751_s0 = inlined_call_operand.hbm [shape: f32[16,256], index: 0, kind: input, shape index: {}]   ;;  %s752_s1 = inlined_call_operand.hbm [shape: f32[1,256], index: 1, kind: input, shape index: {}]   ;;  %s753_s2 = inlined_call_operand.vmem [shape: f32[1,256], index: 2, kind: input, shape index: {}]   ;;  %s754_s3 = inlined_call_operand.hbm [shape: f32[16,256], index: 3, kind: output, shape index: {}]  }
   0x1   :  { %10 = vsyncpa [#allocation3 + $0x1], 0 }
   0x2   :  { %11 = vsyncpa [#allocation6], 0 }
   0x3   :  { %12 = vsyncpa [#allocation4], 0 }
   0x4   :  { %14 = vsyncpa [#allocation4 + $0x1], 0  ;;  %s572_s12 = smov 0   ;;  %s574_s13 = smov 0  }
   0x5   :  { %s576_s14 = smov 0   ;;  %s578_s15 = smov 0  }
   0x6 LB: > { %s593_s16 = sadd.s32 4294967295, %s547_s15   ;;  %s348_s17 = sadd.s32 4294967294, %s547_s15   ;;  %s547_s15 = sphi %s578_s15, %s777_s15   ;;  %s543_s14 = sphi %s576_s14, %s776_s14   ;;  %s539_s13 = sphi %s574_s13, %s775_s13   ;;  %s535_s12 = sphi %s572_s12, %s774_s12  }
   0x7   : > { %p40_p0 = scmp.ne.s32.totalorder %s539_s13, %s535_s12  ;;  %p755_p1 = scmp.eq.s32.totalorder %s593_s16, 0 }
   0x8   : > { %p112_p3 = scmp.eq.s32.totalorder %s348_s17, 1  ;;  %p349_p5 = scmp.ge.s32.totalorder %s547_s15, 1 }
   0x9   : > { %p602_p4 = por %p755_p1, %p40_p0  ;;  %p119_p7 = scmp.lt.s32.totalorder %s547_s15, 3 }
   0xa   : > { %p607_p6 = por %p112_p3, %p40_p0  ;;  %s549_s21 = smov [#allocation5]  }
   0xb   : > { %s759_s18 = scalar_select %p602_p4, 1, 0 }
   0xc   : > { %s760_s19 = scalar_select %p607_p6, 1, 0 }
   0xd   : > { %p612_p8 = pnand %p349_p5, %p119_p7  ;;  %s132_s22 = sshll.u32 %s549_s21, 4  ;;  %s133_s22 = int_to_ptr.vmem [resolvable:$true] %s132_s22 }
   0xe   : > { %s620_s23 = sadd.s32 1, %s547_s15   ;;  %s27_s27 = sadd.s32 1, %s543_s14 }
   0xf   : > { %s761_s20 = scalar_select %p612_p8, 1, 0 }
  0x10   : > { %p374_p10 = pneg %p612_p8  ;;  %s24_s25 = ssub.s32 %s547_s15, %s620_s23 }
  0x11   : > { %p630_p12 = scmp.eq.s32.totalorder %s24_s25, 0  ;;  %p34_p13 = scmp.ne.s32.totalorder %s543_s14, %s539_s13 }
  0x12   : > { %p624_p11 = pnand %p374_p10, %p755_p1  ;;  %s436_s28 = scalar_lea.vmem %s133_s22, 32 }
  0x13   : > { %p437_p3 = scmp.ne.s32.totalorder %s133_s22, %s436_s28  ;;  %p444_p9 = scmp.lt.s32.totalorder %s133_s22, %s133_s22 }
  0x14   : > { %p427_p0 = pneg %p624_p11  ;;  %p445_p2 = scmp.lt.s32.totalorder %s436_s28, %s436_s28 }
  0x16   : > { %p439_p5 = pnand %p437_p3, %p427_p0  ;;  %p446_p10 = por %p445_p2, %p444_p9 }
  0x18   : > { %p440_p7 = pneg %p439_p5 }
  0x1a   : > { %p447_p1 = pnand %p446_p10, %p440_p7 }
  0x1c   : > { %450 = shalt.err (!%p447_p1)
}
  0x1d   : > { %377 = dma.hbm_to_vmem [thread:$0]  (!%p624_p11), %s752_s1, 32, %s133_s22, [#allocation6]  }
  0x1e   : > { %s647_s4 = scalar_select %p630_p12, %s543_s14, %s27_s27  }
  0x1f   : > { %p35_p1 = scmp.eq.s32.totalorder %s547_s15, 0  ;;  %p764_p2 = scmp.eq.s32.totalorder %s593_s16, 1 }
  0x20   : > { %p387_p0 = scmp.lt.s32.totalorder %s547_s15, 2  ;;  %s146_s6 = sand.u32 1, %s543_s14  }
  0x21   : > { %p655_p9 = por %p764_p2, %p34_p13  ;;  %p36_p3 = por %p35_p1, %p34_p13 }
  0x22   : > { %s352_s7 = sshll.u32 %s146_s6, 4  ;;  %s364_s8 = sshll.u32 %s547_s15, 8 }
  0x23   : > { %s765_s5 = scalar_select %p655_p9, 1, 0 }
  0x24   : > { %s668_s11 = scalar_lea.hbm %s751_s0, %s364_s8  ;;  %s150_s17 = scalar_lea.vmem [#allocation2], %s352_s7 }
  0x25   : > { %s158_s21 = sshll.u32 %s150_s17, 4  ;;  %p670_p11 = pnand %p387_p0, %p36_p3  ;;  %s159_s21 = int_to_ptr.vmem [resolvable:$true] %s158_s21 }
  0x26   : > { %s147_s24 = scalar_lea.sflag [#allocation3], %s146_s6  ;;  %s451_s25 = scalar_lea.hbm %s668_s11, 256 }
  0x27   : > { %p452_p12 = scmp.ne.s32.totalorder %s668_s11, %s451_s25  ;;  %p453_p13 = pneg %p670_p11 }
  0x28   : > { %s456_s28 = scalar_lea.hbm %s751_s0, 512  ;;  %p457_p10 = scmp.lt.s32.totalorder %s668_s11, %s751_s0 }
  0x29   : > { %p454_p5 = pnand %p453_p13, %p452_p12  ;;  %p458_p1 = scmp.lt.s32.totalorder %s456_s28, %s451_s25 }
  0x2b   : > { %p455_p7 = pneg %p454_p5  ;;  %p459_p2 = por %p458_p1, %p457_p10 }
  0x2d   : > { %p460_p0 = pnand %p459_p2, %p455_p7 }
  0x2f   : > { %463 = shalt.err (!%p460_p0)
}
  0x30   : > { %s464_s7 = scalar_lea.vmem %s159_s21, 256  ;;  %s550_s6 = smov [#allocation2]  }
  0x31   : > { %p465_p3 = scmp.ne.s32.totalorder %s159_s21, %s464_s7  ;;  %s469_s8 = sshll.u32 %s550_s6, 4  ;;  %s470_s8 = int_to_ptr.vmem [resolvable:$false] %s469_s8 }
  0x32   : > { %s471_s9 = scalar_lea.vmem %s470_s8, 512  ;;  %p472_p12 = scmp.lt.s32.totalorder %s159_s21, %s470_s8 }
  0x33   : > { %p467_p6 = pnand %p465_p3, %p453_p13  ;;  %p473_p5 = scmp.lt.s32.totalorder %s471_s9, %s464_s7 }
  0x35   : > { %p468_p9 = pneg %p467_p6  ;;  %p474_p4 = por %p473_p5, %p472_p12 }
  0x37   : > { %p475_p8 = pnand %p474_p4, %p468_p9 }
  0x39   : > { %478 = shalt.err (!%p475_p8)
}
  0x3a   : > { %381 = dma.hbm_to_vmem [thread:$0]  (!%p670_p11), %s668_s11, 256, %s159_s21, %s147_s24  }
  0x3b   : > { %p767_p7 = scmp.ne.s32.totalorder %s761_s20, 0 }
  0x3c   : > { %s691_s10 = sand.u32 (!%p767_p7), 1, %s539_s13   ;;  %p768_p4 = scmp.ne.s32.totalorder (!%p767_p7), %s759_s18, 0 }
  0x3d   : > { %167 = sbr.rel (%p767_p7) target bundleno = 402 (0x192), region = 32  ;;  %s356_s17 = sshll.u32 (!%p767_p7), %s691_s10, 4 }
  0x3e   : > { %s170_s25 = scalar_lea.sflag (!%p767_p7), [#allocation3], %s691_s10  ;;  %s173_s26 = scalar_lea.vmem (!%p767_p7), [#allocation2], %s356_s17 }
  0x42   : > { %522 = dma.done.wait (%p768_p4), %s170_s25, 256  }
  0x43   : > { %524 = vsyncadd (%p768_p4), %s170_s25, 4294967040  ;;  %p769_p6 = scmp.eq.s32.totalorder %s593_s16, 0 }
  0x45   : > { %526 = dma.done.wait (%p769_p6), [#allocation6], 32   ;;  %p770_p8 = pmov %p769_p6 }
  0x46   : > { %v200_v0 = vld [vmem:[%s173_s26] sm:$0xff]  ;;  %v201_v1 = vld [vmem:[%s173_s26 + $0x8] sm:$0xff]  ;;  %v226_v13 = vlaneseq  ;;  %s365_s11 = sshll.u32 %s593_s16, 8  ;;  %s199_s21 = scalar_lea.vmem [#allocation7], %s356_s17 }
  0x47   : > { %528 = vsyncadd (%p770_p8), [#allocation6], 4294967264  ;;  %v202_v2 = vadd.f32 %v201_v1, %v200_v0  ;;  %v223_v21 = vld [vmem:[#allocation5] sm:$0x3]  ;;  %s268_s22 = sshll.u32 %s199_s21, 4  ;;  %s714_s28 = scalar_lea.hbm %s754_s3, %s365_s11  ;;  %s269_s22 = int_to_ptr.vmem [resolvable:$true] %s268_s22 }
  0x48   : > { %v227_v14 = vshrl.u32 %v226_v13, 7  ;;  %v224_v23 = vld [vmem:[%s753_s2] sm:$0x3]  ;;  %s254_s29 = scalar_lea.sflag [#allocation4], %s691_s10  ;;  %s479_s30 = scalar_lea.vmem %s269_s22, 256 }
  0x49   : > { %203 = vadd.xlane.f32.xlu0 %v202_v2  ;;  %p480_p9 = scmp.ne.s32.totalorder %s269_s22, %s479_s30  ;;  %p771_p11 = scmp.ne.s32.totalorder %s765_s5, 0 }
  0x4a   : > { %v228_v18 = vsub.s32 0, %v227_v14  ;;  %v232_v19 = vsub.s32 1, %v227_v14  ;;  %s551_s16 = smov [#allocation7]  }
  0x4b   : > { %p481_p13 = pnand %p480_p9, %p771_p11  ;;  %s483_s7 = sshll.u32 %s551_s16, 4  ;;  %s484_s7 = int_to_ptr.vmem [resolvable:$false] %s483_s7 }
  0x4c   : > { %v229_v24 = vrot.slane %v223_v21, %v228_v18  ;;  %v233_v25 = vrot.slane %v223_v21, %v232_v19  ;;  %v242_v29 = vrot.slane %v224_v23, %v228_v18  ;;  %v246_v30 = vrot.slane %v224_v23, %v232_v19  ;;  %s485_s6 = scalar_lea.vmem %s484_s7, 512  ;;  %p486_p1 = scmp.lt.s32.totalorder %s269_s22, %s484_s7 }
  0x4d   : > { %p482_p10 = pneg %p481_p13  ;;  %p487_p2 = scmp.lt.s32.totalorder %s485_s6, %s479_s30 }
  0x4f   : > { %p488_p0 = por %p487_p2, %p486_p1 }
  0x51   : > { %p489_p3 = pnand %p488_p0, %p482_p10 }
  0xd2   : > { %v204_v3 = vpop.xlane.xlu0 %203 }
  0xd3   : > { %v205_v4 = vmul.f32 0.00390625, %v204_v3 }
  0xd5   : > { %v206_v5 = vsub.f32 %v200_v0, %v205_v4  ;;  %v207_v6 = vsub.f32 %v201_v1, %v205_v4 }
  0xd7   : > { %v208_v7 = vmul.f32 %v206_v5, %v206_v5  ;;  %v209_v8 = vmul.f32 %v207_v6, %v207_v6 }
  0xd9   : > { %v210_v9 = vadd.f32 %v209_v8, %v208_v7 }
  0xdb   : > { %211 = vadd.xlane.f32.xlu0 %v210_v9 }
 0x164   : > { %v212_v10 = vpop.xlane.xlu0 %211 }
 0x165   : > { %v213_v11 = vmul.f32 0.003921569, %v212_v10 }
 0x167   : > { %v214_v12 = vmax.f32 %v213_v11, 1e-12 }
 0x169   : > { %423 = vrsqrt.f32 %v214_v12  ;;  %v216_v15 = vmul.f32 0.5, %v214_v12 }
 0x176   : > { %v424_v16 = vpop.eup %423 }
 0x177   : > { %v217_v17 = vmul.f32 %v424_v16, %v216_v15 }
 0x179   : > { %v218_v20 = vmul.f32 %v424_v16, %v217_v17 }
 0x17b   : > { %v219_v22 = vsub.f32 1.5, %v218_v20 }
 0x17d   : > { %v220_v26 = vmul.f32 %v424_v16, %v219_v22 }
 0x17f   : > { %v221_v27 = vmul.f32 %v220_v26, %v206_v5  ;;  %v222_v28 = vmul.f32 %v220_v26, %v207_v6 }
 0x181   : > { %v236_v31 = vmul.f32 %v229_v24, %v221_v27  ;;  %v237_v32 = vmul.f32 %v233_v25, %v222_v28 }
 0x183   : > { %v249_v33 = vadd.f32 %v242_v29, %v236_v31  ;;  %v250_v34 = vadd.f32 %v246_v30, %v237_v32 }
 0x185   : > { %251 = vst [vmem:[%s199_s21] sm:$0xff] %v249_v33  ;;  %252 = vst [vmem:[%s199_s21 + $0x8] sm:$0xff] %v250_v34 }
 0x186   : > { %492 = shalt.err (!%p489_p3)
}
 0x187   : > { %s493_s8 = scalar_lea.hbm %s714_s28, 256  ;;  %s497_s17 = scalar_lea.hbm %s754_s3, 512 }
 0x188   : > { %p494_p12 = scmp.ne.s32.totalorder %s714_s28, %s493_s8  ;;  %p498_p4 = scmp.lt.s32.totalorder %s714_s28, %s754_s3 }
 0x189   : > { %p499_p6 = scmp.lt.s32.totalorder %s497_s17, %s493_s8 }
 0x18a   : > { %p495_p5 = pnand %p494_p12, %p771_p11 }
 0x18b   : > { %p500_p8 = por %p499_p6, %p498_p4 }
 0x18c   : > { %p496_p7 = pneg %p495_p5 }
 0x18e   : > { %p501_p9 = pnand %p500_p8, %p496_p7 }
 0x190   : > { %504 = shalt.err (!%p501_p9)
}
 0x191   : > { %372 = dma.vmem_to_hbm [thread:$0]  (%p771_p11), %s269_s22, 256, %s714_s28, %s254_s29  }
 0x192 PF: > { %s280_s18 = sand.u32 1, %s535_s12   ;;  %p772_p13 = scmp.ne.s32.totalorder %s760_s19, 0 }
 0x193   : > { %p773_p10 = scmp.ge.s32.totalorder %s547_s15, 2  ;;  %s281_s20 = scalar_lea.sflag [#allocation4], %s280_s18 }
 0x195   : > { %p383_p1 = pnand %p773_p10, %p772_p13 }
 0x197   : > { %p384_p2 = pneg %p383_p1 }
 0x199   : > { %530 = dma.done.wait (%p384_p2), %s281_s20, 256  }
 0x19a   : > { %532 = vsyncadd (%p384_p2), %s281_s20, 4294967040  ;;  %p17_p0 = scmp.ge.s32.totalorder %s620_s23, 4   ;;  %s774_s12 = smov %s539_s13 }
 0x19b   : > { %s775_s13 = smov %s543_s14  ;;  %s776_s14 = smov %s647_s4 }
 0x19c   : > { %s777_s15 = smov %s620_s23  ;;  %19 = sbr.rel (!%p17_p0) target bundleno = 6 (0x6), region = 81 }
 0x1a1   :  { %286 = vsyncpa [#allocation3], 1 }
 0x1a2   :  { %288 = vsyncpa [#allocation3 + $0x1], 1 }
 0x1a3   :  { %289 = vsyncpa [#allocation6], 1 }
 0x1a4   :  { %290 = vsyncpa [#allocation4], 1 }
 0x1a5   :  { %292 = vsyncpa [#allocation4 + $0x1], 1 }

</bundles_post_ra>
